<compile_context>
chip_gen: v7x
topology: tpu7x:2x2x1
jax: 0.10.0
libtpu: 0.0.40
codegen_flags: <defaults>
</compile_context>

<pallas_src>
import functools

import jax
import jax.numpy as jnp
from jax import lax
from jax.experimental import pallas as pl
from jax.experimental.pallas import tpu as pltpu

_VMEM_LIMIT_BYTES = 48 * 1024 * 1024  # < v7x 64 MiB physical; fine on v5e/v6e.


def _row_loss(x, tgt, *, smoothing, n_classes, int_targets):
    """Per-row smoothed-CE loss for one (block_rows, C) tile -> (block_rows, 1) f32.

    Two fused passes over the raw tile; the shifted values (x - m) only feed
    exp and are never materialized as a (TM, C) temporary.
    """
    s = float(smoothing)
    c = float(n_classes)

    # ---- pass 1: reductions directly over the raw (possibly bf16) tile ----
    m = jnp.max(x, axis=-1, keepdims=True).astype(jnp.float32)          # (TM, 1)
    sum_x = jnp.sum(x.astype(jnp.float32), axis=-1, keepdims=True)      # (TM, 1)
    if int_targets:
        classes = lax.broadcasted_iota(jnp.int32, x.shape, 1)
        tgt_x = jnp.sum(jnp.where(classes == tgt, x.astype(jnp.float32), 0.0),
                        axis=-1, keepdims=True)                         # (TM, 1)
    else:
        t = tgt.astype(jnp.float32)
        sum_t = jnp.sum(t, axis=-1, keepdims=True)
        dot_tx = jnp.sum(t * x.astype(jnp.float32), axis=-1, keepdims=True)

    # ---- pass 2: exp-sum (EUP) over shifted values ----
    sum_exp = jnp.sum(jnp.exp(x.astype(jnp.float32) - m), axis=-1, keepdims=True)
    lse = jnp.log(sum_exp)

    sum_shift = sum_x - c * m
    if int_targets:
        tgt_shift = tgt_x - m
        return lse - (1.0 - s) * tgt_shift - (s / c) * sum_shift
    dot_shift = dot_tx - m * sum_t
    return -((1.0 - s) * (dot_shift - lse * sum_t) + (s / c) * (sum_shift - c * lse))


def _valid_row_mask(block_rows, n_rows):
    """(block_rows, 1) bool mask of rows that are inside the real array."""
    row = (pl.program_id(0) * block_rows
           + lax.broadcasted_iota(jnp.int32, (block_rows, 1), 0))
    return row < n_rows


def _ls_row_kernel(logits_ref, targets_ref, out_ref, *, smoothing, n_classes,
                   n_rows, block_rows, int_targets):
    loss = _row_loss(logits_ref[...], targets_ref[...], smoothing=smoothing,
                     n_classes=n_classes, int_targets=int_targets)   # (TM, 1)
    out_ref[...] = jnp.where(_valid_row_mask(block_rows, n_rows), loss, 0.0)


def _choose_block_rows(n_rows, row_bytes, work_row_bytes):
    # ~8 MiB of streamed input per tile: at v7x's ~3.2 TB/s HBM this keeps the
    # ~0.35 us/grid-step overhead at ~10-12% of tile DMA time (vs ~35% at the
    # old 2 MiB); on v5e/v6e it is a small free win.  Clamp by bytes, not rows.
    target = 8 * 1024 * 1024
    tm = target // max(1, row_bytes)
    # Keep double-buffered inputs + in-kernel f32 working set inside the
    # scoped VMEM limit with headroom.
    budget = int(_VMEM_LIMIT_BYTES * 0.75)
    per_row_bytes = 2 * row_bytes + work_row_bytes
    tm = min(tm, budget // max(1, per_row_bytes))
    tm = max(8, (tm // 8) * 8)
    # TODO(synk): for vocab-scale C (>~64K classes) add a class-axis grid
    # dimension with an online-softmax (running m/l) accumulation instead of
    # requiring a full row of logits in VMEM.
    if tm >= n_rows:
        return n_rows            # single block == full dim (always legal)
    return tm


def label_smoothing_loss(inputs, targets, smoothing=0.1, reduction="mean",
                         block_rows=None):
    """Pallas equivalent of LabelSmoothingLoss.forward.

    inputs:  (N, C) float logits (f32 or bf16; bf16 halves HBM read bytes and
             is upcast to f32 inside the fused in-kernel reductions).
    targets: (N,) integer class ids OR (N, C) float soft targets.
    """
    assert 0 <= smoothing < 1
    if reduction not in ("mean", "sum", "none"):
        raise ValueError(f"Invalid reduction mode: {reduction}")
    n, c = inputs.shape
    in_itemsize = jnp.dtype(inputs.dtype).itemsize

    int_targets = bool(jnp.issubdtype(targets.dtype, jnp.integer))
    if int_targets:
        tgt = targets.reshape(n, 1).astype(jnp.int32)
        tgt_row_bytes = 4
    else:
        if targets.shape != (n, c):
            raise ValueError("float (soft) targets must have shape (N, C)")
        tgt = targets
        tgt_row_bytes = c * jnp.dtype(targets.dtype).itemsize

    # In-kernel f32 working set per row (upcast + exp operand, plus soft-target upcast).
    work_row_bytes = 8 * c + (0 if int_targets else 4 * c)

    if block_rows is None:
        tm = _choose_block_rows(n, c * in_itemsize + tgt_row_bytes, work_row_bytes)
    else:
        tm = min(int(block_rows), n)
        if tm < n:
            tm = max(8, (tm // 8) * 8)
    grid = (pl.cdiv(n, tm),)

    tgt_block_shape = (tm, 1) if int_targets else (tm, c)
    in_specs = [
        pl.BlockSpec((tm, c), lambda i: (i, 0)),
        pl.BlockSpec(tgt_block_shape, lambda i: (i, 0)),
    ]

    cost = pl.CostEstimate(
        flops=6 * n * c,
        transcendentals=n * c + n,
        bytes_accessed=n * c * in_itemsize + n * tgt_row_bytes + n * 4,
    )

    kernel = functools.partial(
        _ls_row_kernel, smoothing=float(smoothing), n_classes=c, n_rows=n,
        block_rows=tm, int_targets=int_targets)

    per_row = pl.pallas_call(
        kernel,
        grid=grid,
        in_specs=in_specs,
        out_specs=pl.BlockSpec((tm, 1), lambda i: (i, 0)),
        out_shape=jax.ShapeDtypeStruct((n, 1), jnp.float32),
        compiler_params=pltpu.CompilerParams(
            dimension_semantics=("parallel",),
            vmem_limit_bytes=_VMEM_LIMIT_BYTES),
        cost_estimate=cost,
    )(inputs, tgt)[:, 0]

    if reduction == "mean":
        return jnp.sum(per_row) / float(n)
    if reduction == "sum":
        return jnp.sum(per_row)
    return per_row


def _reference(inputs, targets, smoothing=0.1, reduction="mean"):
    log_probs = jax.nn.log_softmax(inputs.astype(jnp.float32), axis=-1)
    c = inputs.shape[-1]
    if jnp.issubdtype(targets.dtype, jnp.integer):
        one_hot = jax.nn.one_hot(targets, c, dtype=jnp.float32)
    else:
        one_hot = targets.astype(jnp.float32)
    smooth = (1 - smoothing) * one_hot + smoothing / c
    loss = jnp.sum(-smooth * log_probs, axis=-1)
    if reduction == "mean":
        return loss.mean()
    if reduction == "sum":
        return loss.sum()
    return loss


if __name__ == "__main__":
    key = jax.random.PRNGKey(0)
    k1, k2, k3, k4, k5 = jax.random.split(key, 5)
    checks = []

    # 1) f32 logits, int targets; multi-tile grid with a ragged last tile
    #    (N=20, TM=8 -> 3 tiles, last tile masked).
    N1, C1 = 20, 96
    logits1 = jax.random.normal(k1, (N1, C1), dtype=jnp.float32)
    tgt1 = jax.random.randint(k2, (N1,), 0, C1, dtype=jnp.int32)
    for red in ("mean", "sum", "none"):
        out = jax.block_until_ready(
            label_smoothing_loss(logits1, tgt1, 0.1, red, block_rows=8))
        ref = _reference(logits1, tgt1, 0.1, red)
        checks.append(bool(jnp.allclose(out, ref, atol=1e-4, rtol=1e-4)))

    # 2) bf16 logits streamed from HBM, upcast to f32 inside the kernel.
    N2, C2 = 16, 128
    logits2 = jax.random.normal(k3, (N2, C2), dtype=jnp.float32).astype(jnp.bfloat16)
    tgt2 = jax.random.randint(k4, (N2,), 0, C2, dtype=jnp.int32)
    out = jax.block_until_ready(label_smoothing_loss(logits2, tgt2, 0.1, "mean"))
    ref = _reference(logits2, tgt2, 0.1, "mean")
    checks.append(bool(jnp.allclose(out, ref, atol=1e-4, rtol=1e-4)))

    # 3) float (soft / pre-one-hot) targets path.
    N3, C3 = 16, 64
    logits3 = jax.random.normal(k5, (N3, C3), dtype=jnp.float32)
    soft = jax.nn.softmax(
        jax.random.normal(k2, (N3, C3), dtype=jnp.float32), axis=-1)
    for red in ("mean", "none"):
        out = jax.block_until_ready(label_smoothing_loss(logits3, soft, 0.1, red))
        ref = _reference(logits3, soft, 0.1, red)
        checks.append(bool(jnp.allclose(out, ref, atol=1e-4, rtol=1e-4)))

    if all(checks):
        print("KERNEL_OK")
</pallas_src>

<mosaic_0001>
module attributes {stable_mosaic.version = 11 : i64} {
  func.func @_ls_row_kernel(%arg0: i32, %arg1: memref<8x96xf32, #tpu.memory_space<vmem>>, %arg2: memref<8x1xi32, #tpu.memory_space<vmem>>, %arg3: memref<8x1xf32, #tpu.memory_space<vmem>>) attributes {dimension_semantics = [#tpu.dimension_semantics<parallel>], iteration_bounds = array<i64: 3>, scalar_prefetch = 0 : i64, scratch_operands = 0 : i64, tpu.core_type = #tpu.core_type<tc>, window_params = [{transform_indices = @transform_0, window_bounds = array<i64: 8, 96>}, {transform_indices = @transform_1, window_bounds = array<i64: 8, 1>}, {transform_indices = @transform_2, window_bounds = array<i64: 8, 1>}]} {
    %c0 = arith.constant 0 : index
    %c0_0 = arith.constant 0 : index
    %0 = vector.load %arg1[%c0, %c0_0] : memref<8x96xf32, #tpu.memory_space<vmem>>, vector<8x96xf32>
    %c0_1 = arith.constant 0 : index
    %c0_2 = arith.constant 0 : index
    %1 = vector.load %arg2[%c0_1, %c0_2] : memref<8x1xi32, #tpu.memory_space<vmem>>, vector<8x1xi32>
    %cst = arith.constant dense<0xFF800000> : vector<8xf32>
    %2 = vector.multi_reduction <maximumf>, %0, %cst [1] : vector<8x96xf32> to vector<8xf32>
    %3 = vector.shape_cast %2 : vector<8xf32> to vector<8x1xf32>
    %cst_3 = arith.constant dense<0.000000e+00> : vector<8xf32>
    %4 = vector.multi_reduction <add>, %0, %cst_3 [1] : vector<8x96xf32> to vector<8xf32>
    %5 = vector.shape_cast %4 : vector<8xf32> to vector<8x1xf32>
    %6 = tpu.iota {dimensions = array<i32: 1>} : vector<8x96xi32>
    %7 = vector.broadcast %1 : vector<8x1xi32> to vector<8x96xi32>
    %8 = arith.cmpi eq, %6, %7 : vector<8x96xi32>
    %cst_4 = arith.constant 0.000000e+00 : f32
    %9 = vector.broadcast %cst_4 : f32 to vector<8x96xf32>
    %10 = arith.select %8, %0, %9 : vector<8x96xi1>, vector<8x96xf32>
    %cst_5 = arith.constant dense<0.000000e+00> : vector<8xf32>
    %11 = vector.multi_reduction <add>, %10, %cst_5 [1] : vector<8x96xf32> to vector<8xf32>
    %12 = vector.shape_cast %11 : vector<8xf32> to vector<8x1xf32>
    %13 = vector.broadcast %3 : vector<8x1xf32> to vector<8x96xf32>
    %14 = arith.subf %0, %13 : vector<8x96xf32>
    %15 = math.exp %14 : vector<8x96xf32>
    %cst_6 = arith.constant dense<0.000000e+00> : vector<8xf32>
    %16 = vector.multi_reduction <add>, %15, %cst_6 [1] : vector<8x96xf32> to vector<8xf32>
    %17 = vector.shape_cast %16 : vector<8xf32> to vector<8x1xf32>
    %18 = math.log %17 : vector<8x1xf32>
    %cst_7 = arith.constant 9.600000e+01 : f32
    %19 = vector.broadcast %cst_7 : f32 to vector<8x1xf32>
    %20 = arith.mulf %19, %3 : vector<8x1xf32>
    %21 = arith.subf %5, %20 : vector<8x1xf32>
    %22 = arith.subf %12, %3 : vector<8x1xf32>
    %cst_8 = arith.constant 0.899999976 : f32
    %23 = vector.broadcast %cst_8 : f32 to vector<8x1xf32>
    %24 = arith.mulf %23, %22 : vector<8x1xf32>
    %25 = arith.subf %18, %24 : vector<8x1xf32>
    %cst_9 = arith.constant 0.00104166672 : f32
    %26 = vector.broadcast %cst_9 : f32 to vector<8x1xf32>
    %27 = arith.mulf %26, %21 : vector<8x1xf32>
    %28 = arith.subf %25, %27 : vector<8x1xf32>
    %c8_i32 = arith.constant 8 : i32
    %29 = arith.muli %arg0, %c8_i32 : i32
    %30 = tpu.iota {dimensions = array<i32: 0>} : vector<8x1xi32>
    %31 = vector.broadcast %29 : i32 to vector<8x1xi32>
    %32 = arith.addi %31, %30 : vector<8x1xi32>
    %c20_i32 = arith.constant 20 : i32
    %33 = vector.broadcast %c20_i32 : i32 to vector<8x1xi32>
    %34 = arith.cmpi slt, %32, %33 : vector<8x1xi32>
    %cst_10 = arith.constant 0.000000e+00 : f32
    %35 = vector.broadcast %cst_10 : f32 to vector<8x1xf32>
    %36 = arith.select %34, %28, %35 : vector<8x1xi1>, vector<8x1xf32>
    %c0_11 = arith.constant 0 : index
    %c0_12 = arith.constant 0 : index
    %37 = vector.load %arg3[%c0_11, %c0_12] : memref<8x1xf32, #tpu.memory_space<vmem>>, vector<8x1xf32>
    tpu.vector_store %arg3[%c0_11, %c0_12], %36 {strides = array<i32>} : memref<8x1xf32, #tpu.memory_space<vmem>>, vector<8x1xf32>,
    return
  }
  func.func @transform_0(%arg0: i32) -> (i32, i32) {
    %c0_i32 = arith.constant 0 : i32
    %c0_i32_0 = arith.constant 0 : i32
    return %arg0, %c0_i32 : i32, i32
  }
  func.func @transform_1(%arg0: i32) -> (i32, i32) {
    %c0_i32 = arith.constant 0 : i32
    %c0_i32_0 = arith.constant 0 : i32
    return %arg0, %c0_i32 : i32, i32
  }
  func.func @transform_2(%arg0: i32) -> (i32, i32) {
    %c0_i32 = arith.constant 0 : i32
    %c0_i32_0 = arith.constant 0 : i32
    return %arg0, %c0_i32 : i32, i32
  }
}

</mosaic_0001>

<bundles_post_ra>
// kernel: tpu_custom_call.1
= control target key start
LH: loop header
LB: loop body
LE: loop exit
PB: predicated region body
PF: predicated region fallthrough
CT: control target
= control target key end

     0   :  { %s313_s9 = smov 0   ;;  %s347_s0 = inlined_call_operand.vmem [shape: f32[20,96], index: 0, kind: input, shape index: {}]   ;;  %s348_s1 = inlined_call_operand.vmem [shape: s32[20,1], index: 1, kind: input, shape index: {}]   ;;  %s349_s2 = inlined_call_operand.vmem [shape: f32[20,1], index: 2, kind: output, shape index: {}]  }
   0x1 LB: > { %s319_s10 = sadd.s32 4294967295, %s295_s9   ;;  %p268_p0 = scmp.ge.s32.totalorder %s295_s9, 1  ;;  %s295_s9 = sphi %s313_s9, %s12_s9  }
   0x2   : > { %p120_p1 = scmp.lt.s32.totalorder %s295_s9, 4 }
   0x4   : > { %p121_p2 = pnand %p268_p0, %p120_p1 }
   0x5   : > { %p144_p3 = scmp.lt.s32.totalorder (!%p121_p2), %s319_s10, 2  ;;  %v297_v0 = vmov (!%p121_p2), 0   ;;  %vm158_vm0 = vcmask (!%p121_p2), 785408   ;;  %v165_v7 = vlaneseq (!%p121_p2)  ;;  %s272_s19 = sshll.u32 (!%p121_p2), %s319_s10, 3  ;;  %vm197_vm3 = vcmask (!%p121_p2), 7168  }
   0x6   : > { %124 = sbr.rel (%p121_p2) target bundleno = 338 (0x152), region = 28  ;;  %284 = vset.pattern.permute.xlu0 (!%p121_p2), %v297_v0  ;;  %v193_v20 = vstv (!%p121_p2), %s272_s19 }
   0x7   : > { %v166_v8 = vand.u32 (!%p121_p2), 127, %v165_v7  ;;  %v192_v17 = vshrl.u32 (!%p121_p2), %v165_v7, 7 }
   0x9   : > { %v194_v24 = vadd.s32 (!%p121_p2), %v193_v20, %v192_v17 }
   0xb   : > { %vm195_vm2 = vcmp.lt.s32.totalorder (!%p121_p2), %v194_v24, 20 }
   0xd   : > { %s145_s11 = scalar_select %p144_p3, %s319_s10, 2 }
   0xf   : > { %s325_s12 = sshll.u32 %s145_s11, 3 }
  0x10   : > { %s147_s15 = scalar_lea.vmem %s347_s0, %s325_s12  ;;  %s151_s18 = scalar_lea.vmem %s348_s1, %s325_s12 }
  0x11   : > { %v156_v1 = vld [vmem:[%s147_s15] sm:$0xff]  ;;  %s155_s22 = scalar_lea.vmem %s349_s2, %s325_s12 }
  0x12   : > { %v159_v2 = vsel %vm158_vm0, %v156_v1, -inf  ;;  %v157_v3 = vld [vmem:[%s151_s18] sm:$0xff]  ;;  %v162_v14 = vsel %vm158_vm0, %v156_v1, 0.0 }
  0x13   : > { %160 = vmax.xlane.f32.xlu0 %v159_v2 }
  0x29   : > { %168 = vperm.xlu0 %284, %v157_v3  }
  0xa0   : > { %v161_v4 = vpop.xlane.xlu0 %160 }
  0xa1   : > { %v175_v5 = vsub.f32 %v156_v1, %v161_v4  ;;  %v183_v19 = vmul.f32 96.0, %v161_v4 }
  0xa3   : > { %v176_v6 = vmul.f32 1.442695, %v175_v5 }
  0xa5   : > { %285 = vpow2.f32 %v176_v6 }
  0xa8   : > { %v169_v9 = vpop.permute.xlu0 %168 }
  0xa9   : > { %vm170_vm1 = vcmp.eq.s32.totalorder %v166_v8, %v169_v9 }
  0xaa   : > { %v171_v11 = vsel %vm170_vm1, %v156_v1, 0.0 }
  0xab   : > { %v172_v13 = vsel %vm158_vm0, %v171_v11, 0.0 }
  0xaf   : > { %v286_v10 = vpop.eup %285 }
  0xb0   : > { %v178_v12 = vsel %vm158_vm0, %v286_v10, 0.0 }
  0xb1   : > { %179 = vadd.xlane.f32.xlu1 %v178_v12 }
  0xb5   : > { %173 = vadd.xlane.f32.xlu1 %v172_v13 }
  0xb9   : > { %163 = vadd.xlane.f32.xlu1 %v162_v14 }
 0x13e   : > { %v180_v15 = vpop.xlane.xlu1 %179 }
 0x13f   : > { %287 = vlog2.f32 %v180_v15 }
 0x142   : > { %v174_v16 = vpop.xlane.xlu1 %173 }
 0x143   : > { %v185_v18 = vsub.f32 %v174_v16, %v161_v4 }
 0x145   : > { %v186_v26 = vmul.f32 0.9, %v185_v18 }
 0x146   : > { %v164_v21 = vpop.xlane.xlu1 %163 }
 0x147   : > { %v184_v22 = vsub.f32 %v164_v21, %v183_v19 }
 0x149   : > { %v288_v23 = vpop.eup %287  ;;  %v188_v28 = vmul.f32 0.0010416667, %v184_v22 }
 0x14a   : > { %v182_v25 = vmul.f32 0.6931472, %v288_v23 }
 0x14c   : > { %v187_v27 = vsub.f32 %v182_v25, %v186_v26 }
 0x14e   : > { %v189_v29 = vsub.f32 %v187_v27, %v188_v28 }
 0x150   : > { %v196_v30 = vsel %vm195_vm2, %v189_v29, 0.0 }
 0x151   : > { %198 = vst.msk [vmem:[%s155_s22] sm:$0xff] %vm197_vm3, %v196_v30 }
 0x152 PF: > { %s12_s9 = sadd.s32 1, %s295_s9  }
 0x153   : > { %p9_p4 = scmp.ge.s32.totalorder %s12_s9, 5  }
 0x155   :  { %11 = sbr.rel (!%p9_p4) target bundleno = 1 (0x1), region = 61 }

</bundles_post_ra>
